<compile_context>
chip_gen: v6e
topology: v6e:2x2x1
jax: 0.10.0
libtpu: 0.0.40
codegen_flags: <defaults>
</compile_context>

<pallas_src>
import functools

import jax
import jax.numpy as jnp
from jax.experimental import pallas as pl
from jax.experimental.pallas import tpu as pltpu


def gin_kernel(x_ref, adj_ref,
               w1_ref, b1_ref, w2_ref, b2_ref,
               w3_ref, b3_ref, w4_ref, b4_ref,
               wlm_ref, wlx_ref, bl_ref,
               out_ref, *, bt, n, mm_dtype):
    """One grid step = Bt graphs.

    x_ref   : (Bt, N, F_in)  f32 node features
    adj_ref : (Bt, N, N)     mm_dtype (0/1) per-graph adjacency
    w*_ref  : weight matrices at mm_dtype (eval-BN folded into w1/b1, w3/b3)
    b*_ref  : f32 biases (row vectors)
    out_ref : (Bt, 128)      lane-padded per-graph logits for this step
    """

    def mm(a, b):
        # MXU matmul: inputs at mm_dtype, f32 accumulation.
        return jnp.dot(a.astype(mm_dtype), b.astype(mm_dtype),
                       preferred_element_type=jnp.float32)

    adj3 = adj_ref[...]                                    # (bt, n, n) mm_dtype

    def gin_conv(h3, w_a_ref, b_a_ref, w_b_ref, b_b_ref):
        """PyG GINConv (eps=0): MLP(h + A @ h).  h3: (bt, n, f) f32."""
        ah = jnp.einsum("bij,bjf->bif", adj3, h3.astype(mm_dtype),
                        preferred_element_type=jnp.float32)
        # Tile-aligned merge of (bt, n) into the sublane axis (n multiple of 8).
        h = (h3 + ah).reshape(bt * n, h3.shape[-1])        # (bt*n, f) f32
        z = jnp.maximum(mm(h, w_a_ref[...]) + b_a_ref[...], 0.0)
        z = jnp.maximum(mm(z, w_b_ref[...]) + b_b_ref[...], 0.0)
        return z                                           # (bt*n, f_out) f32

    x3 = x_ref[...]                                        # (bt, n, F_in) f32
    z = gin_conv(x3, w1_ref, b1_ref, w2_ref, b2_ref)       # (bt*n, f1)
    z2 = gin_conv(z.reshape(bt, n, z.shape[-1]),
                  w3_ref, b3_ref, w4_ref, b4_ref)          # (bt*n, f2)

    # ---- meanmax readout per graph (split sublane axis bt*n -> (bt, n)) ----
    z2g = z2.reshape(bt, n, z2.shape[-1])                  # (bt, n, f2)
    x_mean = jnp.mean(z2g, axis=1)                         # (bt, f2) f32
    x_max = jnp.max(z2g, axis=1)                           # (bt, f2) f32

    # ---- final Linear(2*f2 -> f2), lane-padded to 128 output lanes ----
    out = mm(x_mean, wlm_ref[...]) + mm(x_max, wlx_ref[...]) + bl_ref[...]
    out_ref[...] = out.astype(out_ref.dtype)


def _fold_bn(w, b, g, be, rm, rv, eps=1e-5):
    """Fold eval-mode BatchNorm1d into the preceding Linear (w: (in, out))."""
    scale = g * jax.lax.rsqrt(rv + eps)                    # (1, out)
    return w * scale, (b - rm) * scale + be


def _pick_block_graphs(B, N):
    """Graphs per grid step (Bt)."""
    rows_target = 1024                       # ~amortizes ~0.35us/step overhead
    bt = max(1, min(B, max(1, rows_target // max(N, 1))))
    if bt < B:
        bt = max(8, (bt // 8) * 8)           # multi-step: out-block sublane dim
    elif B >= 16:
        # Whole batch fits in one step; split into >=2 "parallel" steps so both
        # v7x TensorCores get work.
        bt = max(8, (((B + 1) // 2) // 8) * 8)
    return bt


def gin_forward(x, adj, params, *, block_graphs=None, matmul_dtype=jnp.bfloat16):
    """x: (B, N, F_in) f32, adj: (B, N, N) -> (B, f2) f32.

    matmul_dtype: dtype of all MXU inputs (adjacency, weights, activation
      casts).  Default bfloat16 (exact for the 0/1 adjacency; accumulation and
      all elementwise math stay f32).  Pass jnp.float32 for reference-exact
      numerics.
    """
    B, N, F_in = x.shape
    f1 = params["w1"].shape[1]
    f2 = params["w3"].shape[1]
    out_pad = -(-f2 // 128) * 128            # lane-dense output width

    bt = block_graphs if block_graphs is not None else _pick_block_graphs(B, N)
    num_steps = -(-B // bt)
    Bp = num_steps * bt
    if Bp != B:
        x = jnp.pad(x, ((0, Bp - B), (0, 0), (0, 0)))
        adj = jnp.pad(adj, ((0, Bp - B), (0, 0), (0, 0)))

    md = jnp.dtype(matmul_dtype)
    x_in = x.astype(jnp.float32)             # residual/elementwise path is f32
    adj_in = adj.astype(md)                  # 0/1 entries -> exact in bf16

    # Fold eval-mode BN into the first Linear of each MLP, then cast weights.
    w1f, b1f = _fold_bn(params["w1"], params["b1"], params["g1"],
                        params["be1"], params["rm1"], params["rv1"])
    w3f, b3f = _fold_bn(params["w3"], params["b3"], params["g2"],
                        params["be2"], params["rm2"], params["rv2"])

    # Split the readout weight (pooled = [mean | max]) and pad to 128 lanes.
    pad = out_pad - f2
    wl_mean = jnp.pad(params["wl"][:f2], ((0, 0), (0, pad)))
    wl_max = jnp.pad(params["wl"][f2:], ((0, 0), (0, pad)))
    bl = jnp.pad(params["bl"], ((0, 0), (0, pad)))

    weight_args = [w1f.astype(md), b1f, params["w2"].astype(md), params["b2"],
                   w3f.astype(md), b3f, params["w4"].astype(md), params["b4"],
                   wl_mean.astype(md), wl_max.astype(md), bl]

    # Weights: whole-array, non-pipelined VMEM residents (no double-buffering).
    w_spec = pl.BlockSpec(memory_space=pltpu.MemorySpace.VMEM)
    in_specs = [
        pl.BlockSpec((bt, N, F_in), lambda g: (g, 0, 0)),
        pl.BlockSpec((bt, N, N), lambda g: (g, 0, 0)),
    ] + [w_spec] * len(weight_args)
    out_spec = pl.BlockSpec((bt, out_pad), lambda g: (g, 0))

    # Advisory scheduler hint: at these sizes end-to-end time is dominated by
    # launch/DMA, so tell XLA how small this really is.
    flops = 2 * Bp * N * (N * F_in + F_in * f1 + f1 * f1
                          + N * f1 + f1 * f2 + f2 * f2) + 4 * Bp * f2 * out_pad
    bytes_accessed = (int(x_in.size) * 4 + int(adj_in.size) * md.itemsize
                      + Bp * out_pad * 4
                      + sum(int(w.size) * w.dtype.itemsize for w in weight_args))
    cost = pl.CostEstimate(flops=int(flops), transcendentals=0,
                           bytes_accessed=int(bytes_accessed))

    kernel = functools.partial(gin_kernel, bt=bt, n=N, mm_dtype=md)

    out = pl.pallas_call(
        kernel,
        out_shape=jax.ShapeDtypeStruct((Bp, out_pad), jnp.float32),
        grid_spec=pltpu.PrefetchScalarGridSpec(
            num_scalar_prefetch=0,
            grid=(num_steps,),
            in_specs=in_specs,
            out_specs=out_spec,
        ),
        compiler_params=pltpu.CompilerParams(
            dimension_semantics=("parallel",)),
        cost_estimate=cost,
    )(x_in, adj_in, *weight_args)
    return out[:B, :f2]


def init_params(key, num_nodes, f1, f2):
    """Deterministic init mimicking _reset_parameters:
    dim>1 -> xavier_uniform, dim==1 -> uniform(0,1). BN running stats at defaults."""
    ks = jax.random.split(key, 16)

    def xavier(k, fan_in, fan_out):
        limit = jnp.sqrt(6.0 / (fan_in + fan_out))
        # stored pre-transposed as (in, out)
        return jax.random.uniform(k, (fan_in, fan_out), jnp.float32, -limit, limit)

    def unif(k, n):
        return jax.random.uniform(k, (1, n), jnp.float32, 0.0, 1.0)

    params = {
        # conv1 MLP
        "w1": xavier(ks[0], num_nodes, f1), "b1": unif(ks[1], f1),
        "g1": unif(ks[2], f1), "be1": unif(ks[3], f1),
        "rm1": jnp.zeros((1, f1), jnp.float32), "rv1": jnp.ones((1, f1), jnp.float32),
        "w2": xavier(ks[4], f1, f1), "b2": unif(ks[5], f1),
        # conv2 MLP
        "w3": xavier(ks[6], f1, f2), "b3": unif(ks[7], f2),
        "g2": unif(ks[8], f2), "be2": unif(ks[9], f2),
        "rm2": jnp.zeros((1, f2), jnp.float32), "rv2": jnp.ones((1, f2), jnp.float32),
        "w4": xavier(ks[10], f2, f2), "b4": unif(ks[11], f2),
        # final linear (readout = meanmax -> in dim 2*f2)
        "wl": xavier(ks[12], 2 * f2, f2), "bl": unif(ks[13], f2),
    }
    return params


def gin_reference(x, adj, p):
    """Pure-JAX reference (un-folded BN, eval mode) for correctness checking."""
    eps = 1e-5

    def conv(h, adj, w_a, b_a, g, be, rm, rv, w_b, b_b):
        h = h + jnp.einsum("bij,bjf->bif", adj, h)
        z = jnp.einsum("bnf,fk->bnk", h, w_a) + b_a
        z = g * (z - rm) / jnp.sqrt(rv + eps) + be
        z = jnp.maximum(z, 0.0)
        z = jnp.einsum("bnf,fk->bnk", z, w_b) + b_b
        return jnp.maximum(z, 0.0)

    z = conv(x, adj, p["w1"], p["b1"], p["g1"], p["be1"], p["rm1"], p["rv1"], p["w2"], p["b2"])
    z = conv(z, adj, p["w3"], p["b3"], p["g2"], p["be2"], p["rm2"], p["rv2"], p["w4"], p["b4"])
    pooled = jnp.concatenate([z.mean(axis=1), z.max(axis=1)], axis=1)
    return pooled @ p["wl"] + p["bl"]


if __name__ == "__main__":
    B, N_NODES, F1, F2 = 2, 16, 32, 16   # num_nodes=16 (F_in == nodes per graph), f1=32, f2=16

    key = jax.random.PRNGKey(0)
    k_x, k_a, k_p = jax.random.split(key, 3)

    # Node features: (B, N, num_nodes); for connectome-style GIN, F_in == N.
    x = jax.random.normal(k_x, (B, N_NODES, N_NODES), jnp.float32)

    # Dense symmetric binary adjacency, no self-loops.
    a_raw = jax.random.uniform(k_a, (B, N_NODES, N_NODES))
    adj = (a_raw > 0.7).astype(jnp.float32)
    adj = jnp.maximum(adj, jnp.transpose(adj, (0, 2, 1)))
    adj = adj * (1.0 - jnp.eye(N_NODES, dtype=jnp.float32)[None])

    params = init_params(k_p, N_NODES, F1, F2)
    ref = gin_reference(x, adj, params)

    # f32 matmul path: must match the pure-JAX (un-folded BN) reference tightly.
    out_f32 = jax.block_until_ready(
        gin_forward(x, adj, params, matmul_dtype=jnp.float32))
    assert out_f32.shape == (B, F2)
    assert jnp.allclose(out_f32, ref, atol=1e-4, rtol=1e-4), "f32 mismatch vs JAX reference"

    # Default path: bf16 matmul inputs (v6e/v7x MXU-native, safe on v5e);
    # accumulation and elementwise math stay f32.
    out_bf16 = jax.block_until_ready(gin_forward(x, adj, params))
    assert out_bf16.shape == (B, F2)
    rel = jnp.linalg.norm(out_bf16 - ref) / (jnp.linalg.norm(ref) + 1e-12)
    assert bool(rel < 5e-2), f"bf16 relative error too large: {rel}"

    print("KERNEL_OK")
</pallas_src>

<mosaic_0001>
module attributes {stable_mosaic.version = 11 : i64} {
  func.func @gin_kernel(%arg0: i32, %arg1: memref<2x16x16xf32, #tpu.memory_space<vmem>>, %arg2: memref<2x16x16xf32, #tpu.memory_space<vmem>>, %arg3: memref<16x32xf32, #tpu.memory_space<vmem>>, %arg4: memref<1x32xf32, #tpu.memory_space<vmem>>, %arg5: memref<32x32xf32, #tpu.memory_space<vmem>>, %arg6: memref<1x32xf32, #tpu.memory_space<vmem>>, %arg7: memref<32x16xf32, #tpu.memory_space<vmem>>, %arg8: memref<1x16xf32, #tpu.memory_space<vmem>>, %arg9: memref<16x16xf32, #tpu.memory_space<vmem>>, %arg10: memref<1x16xf32, #tpu.memory_space<vmem>>, %arg11: memref<16x128xf32, #tpu.memory_space<vmem>>, %arg12: memref<16x128xf32, #tpu.memory_space<vmem>>, %arg13: memref<1x128xf32, #tpu.memory_space<vmem>>, %arg14: memref<2x128xf32, #tpu.memory_space<vmem>>) attributes {dimension_semantics = [#tpu.dimension_semantics<parallel>], iteration_bounds = array<i64: 1>, scalar_prefetch = 0 : i64, scratch_operands = 0 : i64, tpu.core_type = #tpu.core_type<tc>, window_params = [{transform_indices = @transform_0, window_bounds = array<i64: 2, 16, 16>}, {transform_indices = @transform_1, window_bounds = array<i64: 2, 16, 16>}, {pipeline_mode = #tpu.pipeline_mode<synchronous>, transform_indices = @transform_2, window_bounds = array<i64: 16, 32>}, {pipeline_mode = #tpu.pipeline_mode<synchronous>, transform_indices = @transform_3, window_bounds = array<i64: 1, 32>}, {pipeline_mode = #tpu.pipeline_mode<synchronous>, transform_indices = @transform_4, window_bounds = array<i64: 32, 32>}, {pipeline_mode = #tpu.pipeline_mode<synchronous>, transform_indices = @transform_5, window_bounds = array<i64: 1, 32>}, {pipeline_mode = #tpu.pipeline_mode<synchronous>, transform_indices = @transform_6, window_bounds = array<i64: 32, 16>}, {pipeline_mode = #tpu.pipeline_mode<synchronous>, transform_indices = @transform_7, window_bounds = array<i64: 1, 16>}, {pipeline_mode = #tpu.pipeline_mode<synchronous>, transform_indices = @transform_8, window_bounds = array<i64: 16, 16>}, {pipeline_mode = #tpu.pipeline_mode<synchronous>, transform_indices = @transform_9, window_bounds = array<i64: 1, 16>}, {pipeline_mode = #tpu.pipeline_mode<synchronous>, transform_indices = @transform_10, window_bounds = array<i64: 16, 128>}, {pipeline_mode = #tpu.pipeline_mode<synchronous>, transform_indices = @transform_11, window_bounds = array<i64: 16, 128>}, {pipeline_mode = #tpu.pipeline_mode<synchronous>, transform_indices = @transform_12, window_bounds = array<i64: 1, 128>}, {transform_indices = @transform_13, window_bounds = array<i64: 2, 128>}]} {
    %c0 = arith.constant 0 : index
    %c0_0 = arith.constant 0 : index
    %c0_1 = arith.constant 0 : index
    %0 = vector.load %arg2[%c0, %c0_0, %c0_1] : memref<2x16x16xf32, #tpu.memory_space<vmem>>, vector<2x16x16xf32>
    %c0_2 = arith.constant 0 : index
    %c0_3 = arith.constant 0 : index
    %c0_4 = arith.constant 0 : index
    %1 = vector.load %arg1[%c0_2, %c0_3, %c0_4] : memref<2x16x16xf32, #tpu.memory_space<vmem>>, vector<2x16x16xf32>
    "tpu.trace_start"() <{level = 10 : i32, message = "bij,bjf->bif"}> : () -> ()
    %cst = arith.constant dense<0.000000e+00> : vector<2x16x16xf32>
    %2 = tpu.matmul %0, %1, %cst {dimension_numbers = #tpu.dot_dimension_numbers<[2], [1], [1], [2], [0, 0, 0, 1, 1, 2], [0], [0]>} : vector<2x16x16xf32>, vector<2x16x16xf32>, vector<2x16x16xf32> -> vector<2x16x16xf32>
    "tpu.trace_stop"() : () -> ()
    %3 = arith.addf %1, %2 : vector<2x16x16xf32>
    %4 = vector.shape_cast %3 : vector<2x16x16xf32> to vector<32x16xf32>
    %c0_5 = arith.constant 0 : index
    %c0_6 = arith.constant 0 : index
    %5 = vector.load %arg3[%c0_5, %c0_6] : memref<16x32xf32, #tpu.memory_space<vmem>>, vector<16x32xf32>
    %cst_7 = arith.constant dense<0.000000e+00> : vector<32x32xf32>
    %6 = tpu.matmul %4, %5, %cst_7 {dimension_numbers = #tpu.dot_dimension_numbers<[1], [0], [0], [1], [0, 0, 1, 1], [], []>} : vector<32x16xf32>, vector<16x32xf32>, vector<32x32xf32> -> vector<32x32xf32>
    %c0_8 = arith.constant 0 : index
    %c0_9 = arith.constant 0 : index
    %7 = vector.load %arg4[%c0_8, %c0_9] : memref<1x32xf32, #tpu.memory_space<vmem>>, vector<1x32xf32>
    %8 = vector.broadcast %7 : vector<1x32xf32> to vector<32x32xf32>
    %9 = arith.addf %6, %8 : vector<32x32xf32>
    %cst_10 = arith.constant 0.000000e+00 : f32
    %10 = vector.broadcast %cst_10 : f32 to vector<32x32xf32>
    %11 = arith.maximumf %9, %10 : vector<32x32xf32>
    %c0_11 = arith.constant 0 : index
    %c0_12 = arith.constant 0 : index
    %12 = vector.load %arg5[%c0_11, %c0_12] : memref<32x32xf32, #tpu.memory_space<vmem>>, vector<32x32xf32>
    %cst_13 = arith.constant dense<0.000000e+00> : vector<32x32xf32>
    %13 = tpu.matmul %11, %12, %cst_13 {dimension_numbers = #tpu.dot_dimension_numbers<[1], [0], [0], [1], [0, 0, 1, 1], [], []>} : vector<32x32xf32>, vector<32x32xf32>, vector<32x32xf32> -> vector<32x32xf32>
    %c0_14 = arith.constant 0 : index
    %c0_15 = arith.constant 0 : index
    %14 = vector.load %arg6[%c0_14, %c0_15] : memref<1x32xf32, #tpu.memory_space<vmem>>, vector<1x32xf32>
    %15 = vector.broadcast %14 : vector<1x32xf32> to vector<32x32xf32>
    %16 = arith.addf %13, %15 : vector<32x32xf32>
    %cst_16 = arith.constant 0.000000e+00 : f32
    %17 = vector.broadcast %cst_16 : f32 to vector<32x32xf32>
    %18 = arith.maximumf %16, %17 : vector<32x32xf32>
    %19 = vector.shape_cast %18 : vector<32x32xf32> to vector<2x16x32xf32>
    "tpu.trace_start"() <{level = 10 : i32, message = "bij,bjf->bif"}> : () -> ()
    %cst_17 = arith.constant dense<0.000000e+00> : vector<2x16x32xf32>
    %20 = tpu.matmul %0, %19, %cst_17 {dimension_numbers = #tpu.dot_dimension_numbers<[2], [1], [1], [2], [0, 0, 0, 1, 1, 2], [0], [0]>} : vector<2x16x16xf32>, vector<2x16x32xf32>, vector<2x16x32xf32> -> vector<2x16x32xf32>
    "tpu.trace_stop"() : () -> ()
    %21 = arith.addf %19, %20 : vector<2x16x32xf32>
    %22 = vector.shape_cast %21 : vector<2x16x32xf32> to vector<32x32xf32>
    %c0_18 = arith.constant 0 : index
    %c0_19 = arith.constant 0 : index
    %23 = vector.load %arg7[%c0_18, %c0_19] : memref<32x16xf32, #tpu.memory_space<vmem>>, vector<32x16xf32>
    %cst_20 = arith.constant dense<0.000000e+00> : vector<32x16xf32>
    %24 = tpu.matmul %22, %23, %cst_20 {dimension_numbers = #tpu.dot_dimension_numbers<[1], [0], [0], [1], [0, 0, 1, 1], [], []>} : vector<32x32xf32>, vector<32x16xf32>, vector<32x16xf32> -> vector<32x16xf32>
    %c0_21 = arith.constant 0 : index
    %c0_22 = arith.constant 0 : index
    %25 = vector.load %arg8[%c0_21, %c0_22] : memref<1x16xf32, #tpu.memory_space<vmem>>, vector<1x16xf32>
    %26 = vector.broadcast %25 : vector<1x16xf32> to vector<32x16xf32>
    %27 = arith.addf %24, %26 : vector<32x16xf32>
    %cst_23 = arith.constant 0.000000e+00 : f32
    %28 = vector.broadcast %cst_23 : f32 to vector<32x16xf32>
    %29 = arith.maximumf %27, %28 : vector<32x16xf32>
    %c0_24 = arith.constant 0 : index
    %c0_25 = arith.constant 0 : index
    %30 = vector.load %arg9[%c0_24, %c0_25] : memref<16x16xf32, #tpu.memory_space<vmem>>, vector<16x16xf32>
    %cst_26 = arith.constant dense<0.000000e+00> : vector<32x16xf32>
    %31 = tpu.matmul %29, %30, %cst_26 {dimension_numbers = #tpu.dot_dimension_numbers<[1], [0], [0], [1], [0, 0, 1, 1], [], []>} : vector<32x16xf32>, vector<16x16xf32>, vector<32x16xf32> -> vector<32x16xf32>
    %c0_27 = arith.constant 0 : index
    %c0_28 = arith.constant 0 : index
    %32 = vector.load %arg10[%c0_27, %c0_28] : memref<1x16xf32, #tpu.memory_space<vmem>>, vector<1x16xf32>
    %33 = vector.broadcast %32 : vector<1x16xf32> to vector<32x16xf32>
    %34 = arith.addf %31, %33 : vector<32x16xf32>
    %cst_29 = arith.constant 0.000000e+00 : f32
    %35 = vector.broadcast %cst_29 : f32 to vector<32x16xf32>
    %36 = arith.maximumf %34, %35 : vector<32x16xf32>
    %37 = vector.shape_cast %36 : vector<32x16xf32> to vector<2x16x16xf32>
    %cst_30 = arith.constant dense<0.000000e+00> : vector<2x16xf32>
    %38 = vector.multi_reduction <add>, %37, %cst_30 [1] : vector<2x16x16xf32> to vector<2x16xf32>
    %cst_31 = arith.constant 1.600000e+01 : f32
    %39 = vector.broadcast %cst_31 : f32 to vector<2x16xf32>
    %40 = arith.divf %38, %39 : vector<2x16xf32>
    %cst_32 = arith.constant dense<0xFF800000> : vector<2x16xf32>
    %41 = vector.multi_reduction <maximumf>, %37, %cst_32 [1] : vector<2x16x16xf32> to vector<2x16xf32>
    %c0_33 = arith.constant 0 : index
    %c0_34 = arith.constant 0 : index
    %42 = vector.load %arg11[%c0_33, %c0_34] : memref<16x128xf32, #tpu.memory_space<vmem>>, vector<16x128xf32>
    %cst_35 = arith.constant dense<0.000000e+00> : vector<2x128xf32>
    %43 = tpu.matmul %40, %42, %cst_35 {dimension_numbers = #tpu.dot_dimension_numbers<[1], [0], [0], [1], [0, 0, 1, 1], [], []>} : vector<2x16xf32>, vector<16x128xf32>, vector<2x128xf32> -> vector<2x128xf32>
    %c0_36 = arith.constant 0 : index
    %c0_37 = arith.constant 0 : index
    %44 = vector.load %arg12[%c0_36, %c0_37] : memref<16x128xf32, #tpu.memory_space<vmem>>, vector<16x128xf32>
    %cst_38 = arith.constant dense<0.000000e+00> : vector<2x128xf32>
    %45 = tpu.matmul %41, %44, %cst_38 {dimension_numbers = #tpu.dot_dimension_numbers<[1], [0], [0], [1], [0, 0, 1, 1], [], []>} : vector<2x16xf32>, vector<16x128xf32>, vector<2x128xf32> -> vector<2x128xf32>
    %46 = arith.addf %43, %45 : vector<2x128xf32>
    %c0_39 = arith.constant 0 : index
    %c0_40 = arith.constant 0 : index
    %47 = vector.load %arg13[%c0_39, %c0_40] : memref<1x128xf32, #tpu.memory_space<vmem>>, vector<1x128xf32>
    %48 = vector.broadcast %47 : vector<1x128xf32> to vector<2x128xf32>
    %49 = arith.addf %46, %48 : vector<2x128xf32>
    %c0_41 = arith.constant 0 : index
    %c0_42 = arith.constant 0 : index
    %50 = vector.load %arg14[%c0_41, %c0_42] : memref<2x128xf32, #tpu.memory_space<vmem>>, vector<2x128xf32>
    tpu.vector_store %arg14[%c0_41, %c0_42], %49 {strides = array<i32>} : memref<2x128xf32, #tpu.memory_space<vmem>>, vector<2x128xf32>,
    return
  }
  func.func @transform_0(%arg0: i32) -> (i32, i32, i32) {
    %c0_i32 = arith.constant 0 : i32
    %c0_i32_0 = arith.constant 0 : i32
    %c0_i32_1 = arith.constant 0 : i32
    return %arg0, %c0_i32, %c0_i32_0 : i32, i32, i32
  }
  func.func @transform_1(%arg0: i32) -> (i32, i32, i32) {
    %c0_i32 = arith.constant 0 : i32
    %c0_i32_0 = arith.constant 0 : i32
    %c0_i32_1 = arith.constant 0 : i32
    return %arg0, %c0_i32, %c0_i32_0 : i32, i32, i32
  }
  func.func @transform_2(%arg0: i32) -> (i32, i32) {
    %c0_i32 = arith.constant 0 : i32
    %c0_i32_0 = arith.constant 0 : i32
    %c0_i32_1 = arith.constant 0 : i32
    return %c0_i32, %c0_i32_0 : i32, i32
  }
  func.func @transform_3(%arg0: i32) -> (i32, i32) {
    %c0_i32 = arith.constant 0 : i32
    %c0_i32_0 = arith.constant 0 : i32
    %c0_i32_1 = arith.constant 0 : i32
    return %c0_i32, %c0_i32_0 : i32, i32
  }
  func.func @transform_4(%arg0: i32) -> (i32, i32) {
    %c0_i32 = arith.constant 0 : i32
    %c0_i32_0 = arith.constant 0 : i32
    %c0_i32_1 = arith.constant 0 : i32
    return %c0_i32, %c0_i32_0 : i32, i32
  }
  func.func @transform_5(%arg0: i32) -> (i32, i32) {
    %c0_i32 = arith.constant 0 : i32
    %c0_i32_0 = arith.constant 0 : i32
    %c0_i32_1 = arith.constant 0 : i32
    return %c0_i32, %c0_i32_0 : i32, i32
  }
  func.func @transform_6(%arg0: i32) -> (i32, i32) {
    %c0_i32 = arith.constant 0 : i32
    %c0_i32_0 = arith.constant 0 : i32
    %c0_i32_1 = arith.constant 0 : i32
    return %c0_i32, %c0_i32_0 : i32, i32
  }
  func.func @transform_7(%arg0: i32) -> (i32, i32) {
    %c0_i32 = arith.constant 0 : i32
    %c0_i32_0 = arith.constant 0 : i32
    %c0_i32_1 = arith.constant 0 : i32
    return %c0_i32, %c0_i32_0 : i32, i32
  }
  func.func @transform_8(%arg0: i32) -> (i32, i32) {
    %c0_i32 = arith.constant 0 : i32
    %c0_i32_0 = arith.constant 0 : i32
    %c0_i32_1 = arith.constant 0 : i32
    return %c0_i32, %c0_i32_0 : i32, i32
  }
  func.func @transform_9(%arg0: i32) -> (i32, i32) {
    %c0_i32 = arith.constant 0 : i32
    %c0_i32_0 = arith.constant 0 : i32
    %c0_i32_1 = arith.constant 0 : i32
    return %c0_i32, %c0_i32_0 : i32, i32
  }
  func.func @transform_10(%arg0: i32) -> (i32, i32) {
    %c0_i32 = arith.constant 0 : i32
    %c0_i32_0 = arith.constant 0 : i32
    %c0_i32_1 = arith.constant 0 : i32
    return %c0_i32, %c0_i32_0 : i32, i32
  }
  func.func @transform_11(%arg0: i32) -> (i32, i32) {
    %c0_i32 = arith.constant 0 : i32
    %c0_i32_0 = arith.constant 0 : i32
    %c0_i32_1 = arith.constant 0 : i32
    return %c0_i32, %c0_i32_0 : i32, i32
  }
  func.func @transform_12(%arg0: i32) -> (i32, i32) {
    %c0_i32 = arith.constant 0 : i32
    %c0_i32_0 = arith.constant 0 : i32
    %c0_i32_1 = arith.constant 0 : i32
    return %c0_i32, %c0_i32_0 : i32, i32
  }
  func.func @transform_13(%arg0: i32) -> (i32, i32) {
    %c0_i32 = arith.constant 0 : i32
    %c0_i32_0 = arith.constant 0 : i32
    return %arg0, %c0_i32 : i32, i32
  }
}

</mosaic_0001>

<bundles_post_ra>
// kernel: tpu_custom_call.1
= control target key start
LH: loop header
LB: loop body
LE: loop exit
PB: predicated region body
PF: predicated region fallthrough
CT: control target
= control target key end

     0   :  { %18 = vsyncpa [#allocation3], 0  ;;  %s1725_s0 = inlined_call_operand.vmem [shape: f32[2,16,16], index: 0, kind: input, shape index: {}]   ;;  %s1726_s1 = inlined_call_operand.hbm [shape: f32[2,16,16], index: 1, kind: input, shape index: {}]   ;;  %s1727_s2 = inlined_call_operand.vmem [shape: f32[16,32], index: 2, kind: input, shape index: {}]   ;;  %s1728_s3 = inlined_call_operand.hbm [shape: f32[1,32], index: 3, kind: input, shape index: {}]   ;;  %s1729_s4 = inlined_call_operand.hbm [shape: f32[32,32], index: 4, kind: input, shape index: {}]   ;;  %s1730_s5 = inlined_call_operand.hbm [shape: f32[1,32], index: 5, kind: input, shape index: {}]   ;;  %s1731_s6 = inlined_call_operand.vmem [shape: f32[32,16], index: 6, kind: input, shape index: {}]   ;;  %s1732_s7 = inlined_call_operand.hbm [shape: f32[1,16], index: 7, kind: input, shape index: {}]   ;;  %s1733_s8 = inlined_call_operand.hbm [shape: f32[16,16], index: 8, kind: input, shape index: {}]   ;;  %s1734_s9 = inlined_call_operand.hbm [shape: f32[1,16], index: 9, kind: input, shape index: {}]   ;;  %s1735_s10 = inlined_call_operand.vmem [shape: f32[16,128], index: 10, kind: input, shape index: {}]   ;;  %s1736_s11 = inlined_call_operand.hbm [shape: f32[16,128], index: 11, kind: input, shape index: {}]   ;;  %s1737_s12 = inlined_call_operand.vmem [shape: f32[1,128], index: 12, kind: input, shape index: {}]   ;;  %s1738_s13 = inlined_call_operand.hbm [shape: f32[2,128], index: 13, kind: output, shape index: {}]  }
   0x1   :  { %19 = vsyncpa [#allocation6], 0 }
   0x2   :  { %20 = vsyncpa [#allocation9], 0 }
   0x3   :  { %21 = vsyncpa [#allocation12], 0 }
   0x4   :  { %22 = vsyncpa [#allocation15], 0 }
   0x5   :  { %23 = vsyncpa [#allocation4], 0  ;;  %s1518_s25 = smov [#allocation5]   ;;  %s1519_s27 = smov [#allocation8]  }
   0x6   :  { %s46_s26 = sshll.u32 %s1518_s25, 4  ;;  %s68_s28 = sshll.u32 %s1519_s27, 4  ;;  %s47_s26 = int_to_ptr.vmem [resolvable:$true] %s46_s26  ;;  %s69_s28 = int_to_ptr.vmem [resolvable:$true] %s68_s28 }
   0x7   :  { %s1334_s29 = scalar_lea.vmem %s47_s26, 16  ;;  %s1338_s30 = scalar_lea.vmem %s47_s26, 32 }
   0x8   :  { %p1335_p0 = scmp.ne.s32.totalorder %s47_s26, %s1334_s29  ;;  %p1339_p1 = scmp.lt.s32.totalorder %s47_s26, %s47_s26 }
   0x9   :  { %p1340_p2 = scmp.lt.s32.totalorder %s1338_s30, %s1334_s29 }
   0xb   :  { %p1341_p3 = por %p1340_p2, %p1339_p1 }
   0xd   :  { %p1342_p4 = pnand %p1341_p3, %p1335_p0 }
   0xf   :  { %1345 = shalt.err (!%p1342_p4)
}
  0x10   :  { %49 = dma.hbm_to_vmem [thread:$0]  %s1728_s3, 16, %s47_s26, [#allocation6]  }
  0x11   :  { %s1354_s16 = scalar_lea.vmem %s69_s28, 16  ;;  %s1358_s17 = scalar_lea.vmem %s69_s28, 32 }
  0x12   :  { %p1355_p5 = scmp.ne.s32.totalorder %s69_s28, %s1354_s16  ;;  %p1359_p6 = scmp.lt.s32.totalorder %s69_s28, %s69_s28 }
  0x13   :  { %p1360_p7 = scmp.lt.s32.totalorder %s1358_s17, %s1354_s16 }
  0x15   :  { %p1361_p8 = por %p1360_p7, %p1359_p6 }
  0x17   :  { %p1362_p9 = pnand %p1361_p8, %p1355_p5 }
  0x19   :  { %1365 = shalt.err (!%p1362_p9)
}
  0x1a   :  { %71 = dma.hbm_to_vmem [thread:$0]  %s1730_s5, 16, %s69_s28, [#allocation9]  }
  0x1b   :  { %s1520_s20 = smov [#allocation11]   ;;  %s1521_s22 = smov [#allocation2]  }
  0x1c   :  { %s89_s21 = sshll.u32 %s1520_s20, 4  ;;  %s31_s23 = sshll.u32 %s1521_s22, 4  ;;  %s90_s21 = int_to_ptr.vmem [resolvable:$true] %s89_s21  ;;  %s32_s23 = int_to_ptr.vmem [resolvable:$true] %s31_s23 }
  0x1d   :  { %s1374_s24 = scalar_lea.vmem %s90_s21, 256  ;;  %p1379_p11 = scmp.lt.s32.totalorder %s90_s21, %s90_s21 }
  0x1e   :  { %p1375_p10 = scmp.ne.s32.totalorder %s90_s21, %s1374_s24  ;;  %p1380_p12 = scmp.lt.s32.totalorder %s1374_s24, %s1374_s24 }
  0x20   :  { %p1381_p13 = por %p1380_p12, %p1379_p11 }
  0x22   :  { %p1382_p0 = pnand %p1381_p13, %p1375_p10 }
  0x24   :  { %1385 = shalt.err (!%p1382_p0)
}
  0x25   :  { %s1522_s3 = smov 128   ;;  %s1523_s25 = smov 8  }
  0x26   :  { %95 = dma.hbm_to_vmem [thread:$0]  %s1733_s8, 256, %s90_s21, [#allocation12], %s1522_s3, %s1522_s3, %s1523_s25  }
  0x27   :  { %s1394_s27 = scalar_lea.vmem %s32_s23, 512  ;;  %p1399_p2 = scmp.lt.s32.totalorder %s32_s23, %s32_s23 }
  0x28   :  { %p1395_p1 = scmp.ne.s32.totalorder %s32_s23, %s1394_s27  ;;  %p1400_p3 = scmp.lt.s32.totalorder %s1394_s27, %s1394_s27 }
  0x2a   :  { %p1401_p4 = por %p1400_p3, %p1399_p2 }
  0x2c   :  { %p1402_p5 = pnand %p1401_p4, %p1395_p1 }
  0x2e   :  { %1405 = shalt.err (!%p1402_p5)
}
  0x2f   :  { %37 = dma.hbm_to_vmem [thread:$0]  %s1726_s1, 512, %s32_s23, [#allocation3], %s1522_s3, %s1522_s3, %s1523_s25  }
  0x30   :  { %s1524_s30 = smov [#allocation7]   ;;  %s1525_s15 = smov [#allocation10]  }
  0x31   :  { %s55_s14 = sshll.u32 %s1524_s30, 4  ;;  %s80_s16 = sshll.u32 %s1525_s15, 4  ;;  %s56_s14 = int_to_ptr.vmem [resolvable:$true] %s55_s14  ;;  %s81_s16 = int_to_ptr.vmem [resolvable:$true] %s80_s16 }
  0x32   :  { %s1414_s8 = scalar_lea.vmem %s56_s14, 512  ;;  %p1419_p7 = scmp.lt.s32.totalorder %s56_s14, %s56_s14 }
  0x33   :  { %p1415_p6 = scmp.ne.s32.totalorder %s56_s14, %s1414_s8  ;;  %p1420_p8 = scmp.lt.s32.totalorder %s1414_s8, %s1414_s8 }
  0x35   :  { %p1421_p9 = por %p1420_p8, %p1419_p7 }
  0x37   :  { %p1422_p10 = pnand %p1421_p9, %p1415_p6 }
  0x39   :  { %1425 = shalt.err (!%p1422_p10)
}
  0x3a   :  { %61 = dma.hbm_to_vmem [thread:$0]  %s1729_s4, 512, %s56_s14, [#allocation6], %s1522_s3, %s1522_s3, %s1523_s25  }
  0x3b   :  { %s1434_s1 = scalar_lea.vmem %s81_s16, 16  ;;  %s1438_s19 = scalar_lea.vmem %s81_s16, 32 }
  0x3c   :  { %p1435_p11 = scmp.ne.s32.totalorder %s81_s16, %s1434_s1  ;;  %p1439_p12 = scmp.lt.s32.totalorder %s81_s16, %s81_s16 }
  0x3d   :  { %p1440_p13 = scmp.lt.s32.totalorder %s1438_s19, %s1434_s1 }
  0x3f   :  { %p1441_p0 = por %p1440_p13, %p1439_p12 }
  0x41   :  { %p1442_p1 = pnand %p1441_p0, %p1435_p11 }
  0x43   :  { %1445 = shalt.err (!%p1442_p1)
}
  0x44   :  { %83 = dma.hbm_to_vmem [thread:$0]  %s1732_s7, 16, %s81_s16, [#allocation9]  }
  0x45   :  { %s1526_s22 = smov [#allocation13]   ;;  %s1527_s24 = smov [#allocation14]  }
  0x46   :  { %s102_s23 = sshll.u32 %s1526_s22, 4  ;;  %s113_s26 = sshll.u32 %s1527_s24, 4  ;;  %s103_s23 = int_to_ptr.vmem [resolvable:$true] %s102_s23  ;;  %s114_s26 = int_to_ptr.vmem [resolvable:$true] %s113_s26 }
  0x47   :  { %s1454_s5 = scalar_lea.vmem %s103_s23, 16  ;;  %s1458_s4 = scalar_lea.vmem %s103_s23, 32 }
  0x48   :  { %p1455_p2 = scmp.ne.s32.totalorder %s103_s23, %s1454_s5  ;;  %p1459_p3 = scmp.lt.s32.totalorder %s103_s23, %s103_s23 }
  0x49   :  { %p1460_p4 = scmp.lt.s32.totalorder %s1458_s4, %s1454_s5 }
  0x4b   :  { %p1461_p5 = por %p1460_p4, %p1459_p3 }
  0x4d   :  { %p1462_p6 = pnand %p1461_p5, %p1455_p2 }
  0x4f   :  { %1465 = shalt.err (!%p1462_p6)
}
  0x50   :  { %105 = dma.hbm_to_vmem [thread:$0]  %s1734_s9, 16, %s103_s23, [#allocation12]  }
  0x51   :  { %s1474_s29 = scalar_lea.vmem %s114_s26, 256  ;;  %p1479_p8 = scmp.lt.s32.totalorder %s114_s26, %s114_s26 }
  0x52   :  { %p1475_p7 = scmp.ne.s32.totalorder %s114_s26, %s1474_s29  ;;  %p1480_p9 = scmp.lt.s32.totalorder %s1474_s29, %s1474_s29 }
  0x54   :  { %p1481_p10 = por %p1480_p9, %p1479_p8 }
  0x56   :  { %p1482_p11 = pnand %p1481_p10, %p1475_p7 }
  0x58   :  { %1485 = shalt.err (!%p1482_p11)
}
  0x59   :  { %119 = dma.hbm_to_vmem [thread:$0]  %s1736_s11, 256, %s114_s26, [#allocation15], %s1522_s3, %s1522_s3, %s1523_s25  }
  0x5a   :  { %1506 = dma.done.wait [#allocation3], 512  }
  0x5b   :  { %1507 = vsyncadd [#allocation3], 4294966784 }
  0x5c   :  { %1508 = dma.done.wait [#allocation6], 528  }
  0x5d   :  { %1509 = vsyncadd [#allocation6], 4294966768 }
  0x5e   :  { %1510 = dma.done.wait [#allocation9], 32  }
  0x5f   :  { %1511 = vsyncadd [#allocation9], 4294967264 }
  0x60   :  { %1512 = dma.done.wait [#allocation12], 272  }
  0x61   :  { %1513 = vsyncadd [#allocation12], 4294967024 }
  0x62   :  { %1514 = dma.done.wait [#allocation15], 256  }
  0x63   :  { %1515 = vsyncadd [#allocation15], 4294967040  ;;  %vm154_vm0 = vcmask 130048   ;;  %v151_v0 = vld [vmem:[%s1725_s0 + $0x8] sm:$0xff]  ;;  %v150_v1 = vld [vmem:[%s1725_s0] sm:$0xff]  ;;  %vm442_vm1 = vcmask 261120  }
  0x64   :  { %v146_v2 = vld [vmem:[#allocation2] sm:$0xff]  ;;  %1223 = vmatprep.subr.mxu0 %v151_v0  ;;  %v153_v3 = vld [vmem:[%s1725_s0 + $0x18] sm:$0xff]  ;;  %v152_v4 = vld [vmem:[%s1725_s0 + $0x10] sm:$0xff]  ;;  %vm1529_vm2 = vmmov 0   ;;  %vm965_vm3 = vcmask 1041409   ;;  %s1530_s29 = smov [#allocation16]  }
  0x65   :  { %1227 = vmatprep.mubr.msk.f32.mxu0 %vm154_vm0, %v146_v2  ;;  %1224 = vmatpush3.msra.mxu0 %v151_v0  ;;  %v1650_v5 = vld [vmem:[#allocation2 + $0x8] sm:$0xff]  ;;  %v1652_v6 = vld [vmem:[#allocation2 + $0x10] sm:$0xff]  ;;  %v1654_v7 = vld [vmem:[#allocation2 + $0x18] sm:$0xff]  ;;  %s1129_s7 = sshll.u32 %s1530_s29, 4  ;;  %s1130_s7 = int_to_ptr.vmem [resolvable:$true] %s1129_s7 }
  0x66   :  { %1230 = vmatprep.subr.mxu1 %v153_v3  ;;  %1225 = vmatprep.subr.mxu0 %v150_v1  ;;  %v322_v8 = vld [vmem:[%s1727_s2 + $0x8] sm:$0xff]  ;;  %v321_v9 = vld [vmem:[%s1727_s2] sm:$0xff]  ;;  %v433_v19 = vld [vmem:[#allocation7 + $0x10] sm:$0xff]  ;;  %s1486_s30 = scalar_lea.vmem %s1130_s7, 32  ;;  %p1491_p13 = scmp.lt.s32.totalorder %s1130_s7, %s1130_s7 }
  0x67   :  { %1231 = vmatpush3.msra.mxu1 %v153_v3  ;;  %1226 = vmatpush3.msra.mxu0 %v150_v1  ;;  %v434_v18 = vld [vmem:[#allocation7 + $0x18] sm:$0xff]  ;;  %v432_v20 = vld [vmem:[#allocation7 + $0x8] sm:$0xff]  ;;  %v431_v21 = vld [vmem:[#allocation7] sm:$0xff]  ;;  %p1487_p12 = scmp.ne.s32.totalorder %s1130_s7, %s1486_s30  ;;  %p1492_p0 = scmp.lt.s32.totalorder %s1486_s30, %s1486_s30 }
  0x68   :  { %1232 = vmatprep.subr.mxu1 %v152_v4  ;;  %1228 = vmatmul.mubr.msk.f32.vlgmr.msra.gmra.mxu0 %vm154_vm0, %v1650_v5  ;;  %v1146_v22 = vld [vmem:[#allocation5] ss:$0 sm:$0xff]  ;;  %v701_v35 = vld [vmem:[%s1731_s6 + $0x18] sm:$0xff]  ;;  %v1151_v36 = vld [vmem:[#allocation8] ss:$0 sm:$0xff] }
  0x69   :  { %1233 = vmatpush3.msra.mxu1 %v152_v4  ;;  %1234 = vmatprep.mubr.msk.f32.mxu1 %vm154_vm0, %v1652_v6  ;;  %v700_v49 = vld [vmem:[%s1731_s6 + $0x10] sm:$0xff]  ;;  %v699_v50 = vld [vmem:[%s1731_s6 + $0x8] sm:$0xff]  ;;  %v698_v51 = vld [vmem:[%s1731_s6] sm:$0xff]  ;;  %p1493_p1 = por %p1492_p0, %p1491_p13 }
  0x6a   :  { %1235 = vmatmul.mubr.msk.f32.vlgmr.msra.gmra.mxu1 %vm154_vm0, %v1654_v7  ;;  %1237 = vmatprep.subr.mxu0 %v322_v8  ;;  %v811_v60 = vld [vmem:[#allocation11 + $0x8] sm:$0xff]  ;;  %v810_v61 = vld [vmem:[#allocation11] sm:$0xff]  ;;  %v1160_v62 = vld [vmem:[#allocation10] ss:$0 sm:$0xff] }
  0x6b   :  { %1238 = vmatpush3.msra.mxu0 %v322_v8  ;;  %1247 = vmatprep.subr.mxu1 %v434_v18  ;;  %p1494_p2 = pnand %p1493_p1, %p1487_p12 }
  0x6c   :  { %1239 = vmatprep.subr.mxu0 %v321_v9  ;;  %1248 = vmatpush3.msra.mxu1 %v434_v18 }
  0x6d   :  { %1240 = vmatpush3.msra.mxu0 %v321_v9  ;;  %1249 = vmatprep.subr.mxu1 %v433_v19 }
  0x6e   :  { %1250 = vmatpush3.msra.mxu1 %v433_v19 }
  0x6f   :  { %1251 = vmatprep.subr.mxu1 %v432_v20 }
  0x70   :  { %1252 = vmatpush3.msra.mxu1 %v432_v20 }
  0x71   :  { %1253 = vmatprep.subr.mxu1 %v431_v21 }
  0x72   :  { %1254 = vmatpush3.msra.mxu1 %v431_v21 }
  0x73   :  { %1275 = vmatprep.subr.mxu1 %v701_v35 }
 0x128   :  { %v1229_v10 = vpop.f32.mrf.mxu0 }
 0x129   :  { %v318_v14 = vadd.f32 %v1229_v10, %v151_v0 }
 0x12a   :  { %v227_v11 = vpop.f32.mrf.mxu0  ;;  %v1236_v12 = vpop.f32.mrf.mxu1 }
 0x12b   :  { %v317_v13 = vadd.f32 %v227_v11, %v150_v1  ;;  %v320_v17 = vadd.f32 %v1236_v12, %v153_v3  ;;  %v1528_v11 = vmov 0.0   ;;  %v962_v12 = vld [vmem:[#allocation14 + $0x8] sm:$0xff] }
 0x12c   :  { %v308_v15 = vpop.f32.mrf.mxu1 }
 0x12d   :  { %1241 = vmatprep.mubr.msk.f32.mxu0 %vm154_vm0, %v317_v13  ;;  %v319_v16 = vadd.f32 %v308_v15, %v152_v4  ;;  %v961_v13 = vld [vmem:[#allocation14] sm:$0xff]  ;;  %v959_v15 = vld [vmem:[%s1735_s10] sm:$0xff] }
 0x12e   :  { %1242 = vmatmul.mubr.msk.f32.vlgmr.msra.gmra.mxu0 %vm154_vm0, %v318_v14  ;;  %v960_v14 = vld [vmem:[%s1735_s10 + $0x8] sm:$0xff] }
 0x12f   :  { %1244 = vmatprep.mubr.msk.f32.mxu0 %vm154_vm0, %v319_v16  ;;  %v1165_v16 = vld [vmem:[#allocation13] ss:$0 sm:$0xff] }
 0x132   :  { %1245 = vmatmul.mubr.msk.f32.gmra.mxu0 %vm154_vm0, %v320_v17 }
 0x133   :  { %1265 = vmatprep.mubr.msk.f32.mxu0 %vm154_vm0, %v146_v2 }
 0x1ee   :  { %v1243_v23 = vpop.f32.mrf.mxu0 }
 0x1ef   :  { %v414_v24 = vadd.f32 %v1243_v23, %v1146_v22 }
 0x1f0   :  { %v408_v25 = vpop.f32.mrf.mxu0 }
 0x1f1   :  { %v409_v26 = vadd.f32 %v1146_v22, %v408_v25  ;;  %v428_v29 = vmax.f32 %v414_v24, 0.0 }
 0x1f2   :  { %v1246_v27 = vpop.f32.mrf.mxu0 }
 0x1f3   :  { %v427_v28 = vmax.f32 %v409_v26, 0.0  ;;  %v424_v30 = vadd.f32 %v1246_v27, %v1146_v22 }
 0x1f4   :  { %v418_v31 = vpop.f32.mrf.mxu0 }
 0x1f5   :  { %v419_v32 = vadd.f32 %v1146_v22, %v418_v31  ;;  %1255 = vmatprep.mubr.msk.f32.mxu1 %vm442_vm1, %v427_v28  ;;  %v430_v34 = vmax.f32 %v424_v30, 0.0 }
 0x1f6   :  { %1256 = vmatmul.mubr.msk.f32.vlgmr.msra.gmra.mxu1 %vm442_vm1, %v428_v29 }
 0x1f7   :  { %v429_v33 = vmax.f32 %v419_v32, 0.0  ;;  %1276 = vmatpush3.msra.mxu1 %v701_v35 }
 0x1f8   :  { %1277 = vmatprep.subr.mxu1 %v700_v49 }
 0x1f9   :  { %1258 = vmatprep.mubr.msk.f32.mxu1 %vm442_vm1, %v429_v33  ;;  %1278 = vmatpush3.msra.mxu1 %v700_v49 }
 0x1fa   :  { %1259 = vmatmul.mubr.msk.f32.gmra.mxu1 %vm442_vm1, %v430_v34  ;;  %1279 = vmatprep.subr.mxu1 %v699_v50 }
 0x1fb   :  { %1280 = vmatpush3.msra.mxu1 %v699_v50 }
 0x1fc   :  { %1281 = vmatprep.subr.mxu1 %v698_v51 }
 0x1fd   :  { %1282 = vmatpush3.msra.mxu1 %v698_v51 }
 0x1fe   :  { %1299 = vmatprep.subr.mxu1 %v1528_v11 }
 0x2b6   :  { %v1257_v37 = vpop.f32.mrf.mxu1 }
 0x2b7   :  { %v527_v38 = vadd.f32 %v1257_v37, %v1151_v36 }
 0x2b8   :  { %v521_v39 = vpop.f32.mrf.mxu1 }
 0x2b9   :  { %v541_v40 = vmax.f32 %v527_v38, 0.0  ;;  %v522_v41 = vadd.f32 %v1151_v36, %v521_v39 }
 0x2ba   :  { %v1260_v42 = vpop.f32.mrf.mxu1 }
 0x2bb   :  { %v540_v43 = vmax.f32 %v522_v41, 0.0  ;;  %v537_v44 = vadd.f32 %v1260_v42, %v1151_v36  ;;  %1261 = vmatprep.subr.mxu0 %v541_v40 }
 0x2bc   :  { %v531_v45 = vpop.f32.mrf.mxu1  ;;  %1262 = vmatpush3.msra.mxu0 %v541_v40 }
 0x2bd   :  { %v543_v46 = vmax.f32 %v537_v44, 0.0  ;;  %v532_v47 = vadd.f32 %v1151_v36, %v531_v45  ;;  %1263 = vmatprep.subr.mxu0 %v540_v43 }
 0x2be   :  { %1264 = vmatpush3.msra.mxu0 %v540_v43 }
 0x2bf   :  { %v542_v48 = vmax.f32 %v532_v47, 0.0  ;;  %1266 = vmatmul.mubr.msk.f32.vlgmr.msra.gmra.mxu0 %vm154_vm0, %v1650_v5  ;;  %1268 = vmatprep.subr.mxu0 %v543_v46 }
 0x2c0   :  { %1269 = vmatpush3.msra.mxu0 %v543_v46  ;;  %1272 = vmatprep.mubr.msk.f32.mxu0 %vm154_vm0, %v1652_v6 }
 0x2c1   :  { %1270 = vmatprep.subr.mxu0 %v542_v48 }
 0x2c2   :  { %1271 = vmatpush3.msra.mxu0 %v542_v48 }
 0x2c3   :  { %1273 = vmatmul.mubr.msk.f32.vlgmr.msra.gmra.mxu0 %vm154_vm0, %v1654_v7  ;;  %1289 = vmatprep.subr.mxu0 %v811_v60 }
 0x2c4   :  { %1290 = vmatpush3.msra.mxu0 %v811_v60 }
 0x2c5   :  { %1291 = vmatprep.subr.mxu0 %v810_v61 }
 0x2c6   :  { %1292 = vmatpush3.msra.mxu0 %v810_v61 }
 0x2c7   :  { %1306 = vmatprep.subr.mxu0 %v1528_v11 }
 0x37f   :  { %v1267_v52 = vpop.f32.mrf.mxu0 }
 0x380   :  { %v695_v55 = vadd.f32 %v1267_v52, %v541_v40 }
 0x381   :  { %v610_v53 = vpop.f32.mrf.mxu0 }
 0x382   :  { %v694_v54 = vadd.f32 %v610_v53, %v540_v43 }
 0x383   :  { %v1274_v56 = vpop.f32.mrf.mxu0 }
 0x384   :  { %1283 = vmatprep.mubr.msk.f32.mxu1 %vm442_vm1, %v694_v54  ;;  %v697_v59 = vadd.f32 %v1274_v56, %v543_v46 }
 0x385   :  { %v685_v57 = vpop.f32.mrf.mxu0  ;;  %1284 = vmatmul.mubr.msk.f32.vlgmr.msra.gmra.mxu1 %vm442_vm1, %v695_v55 }
 0x386   :  { %v696_v58 = vadd.f32 %v685_v57, %v542_v48  ;;  %1300 = vmatpush3.msra.mxu1 %v962_v12 }
 0x387   :  { %1301 = vmatprep.subr.mxu1 %v1528_v11 }
 0x388   :  { %1286 = vmatprep.mubr.msk.f32.mxu1 %vm442_vm1, %v696_v58  ;;  %1302 = vmatpush3.msra.mxu1 %v961_v13 }
 0x389   :  { %1287 = vmatmul.mubr.msk.f32.gmra.mxu1 %vm442_vm1, %v697_v59 }
 0x38a   :  { %1303 = vmatprep.mubr.msk.f32.mxu1 %vm1529_vm2, %v1528_v11 }
 0x445   :  { %v1285_v63 = vpop.f32.mrf.mxu1 }
 0x446   :  { %v793_v0 = vadd.f32 %v1285_v63, %v1160_v62 }
 0x447   :  { %v787_v1 = vpop.f32.mrf.mxu1 }
 0x448   :  { %v788_v2 = vadd.f32 %v1160_v62, %v787_v1  ;;  %v807_v5 = vmax.f32 %v793_v0, 0.0 }
 0x449   :  { %v1288_v3 = vpop.f32.mrf.mxu1 }
 0x44a   :  { %v806_v4 = vmax.f32 %v788_v2, 0.0  ;;  %v803_v6 = vadd.f32 %v1288_v3, %v1160_v62 }
 0x44b   :  { %v797_v7 = vpop.f32.mrf.mxu1 }
 0x44c   :  { %v798_v8 = vadd.f32 %v1160_v62, %v797_v7  ;;  %1293 = vmatprep.mubr.msk.f32.mxu0 %vm154_vm0, %v806_v4  ;;  %v809_v10 = vmax.f32 %v803_v6, 0.0 }
 0x44d   :  { %1294 = vmatmul.mubr.msk.f32.vlgmr.msra.gmra.mxu0 %vm154_vm0, %v807_v5 }
 0x44e   :  { %v808_v9 = vmax.f32 %v798_v8, 0.0  ;;  %1307 = vmatpush3.msra.mxu0 %v960_v14  ;;  %v1172_v8 = vld [vmem:[%s1737_s12] ss:$0 sm:$0xff] }
 0x44f   :  { %1308 = vmatprep.subr.mxu0 %v1528_v11 }
 0x450   :  { %1296 = vmatprep.mubr.msk.f32.mxu0 %vm154_vm0, %v808_v9  ;;  %1309 = vmatpush3.msra.mxu0 %v959_v15 }
 0x451   :  { %1297 = vmatmul.mubr.msk.f32.gmra.mxu0 %vm154_vm0, %v809_v10 }
 0x452   :  { %1310 = vmatprep.mubr.msk.f32.mxu0 %vm1529_vm2, %v1528_v11 }
 0x50d   :  { %v1295_v17 = vpop.f32.mrf.mxu0 }
 0x50e   :  { %v903_v18 = vadd.f32 %v1295_v17, %v1165_v16 }
 0x50f   :  { %v897_v19 = vpop.f32.mrf.mxu0 }
 0x510   :  { %v917_v20 = vmax.f32 %v903_v18, 0.0  ;;  %v898_v21 = vadd.f32 %v1165_v16, %v897_v19 }
 0x511   :  { %v1298_v22 = vpop.f32.mrf.mxu0 }
 0x512   :  { %v916_v23 = vmax.f32 %v898_v21, 0.0  ;;  %v913_v24 = vadd.f32 %v1298_v22, %v1165_v16  ;;  %v921_v25 = vsel %vm154_vm0, %v917_v20, 0.0  ;;  %v942_v26 = vsel %vm154_vm0, %v917_v20, -inf }
 0x513   :  { %v907_v27 = vpop.f32.mrf.mxu0 }
 0x514   :  { %v920_v28 = vsel %vm154_vm0, %v916_v23, 0.0  ;;  %v941_v29 = vsel %vm154_vm0, %v916_v23, -inf  ;;  %v919_v30 = vmax.f32 %v913_v24, 0.0  ;;  %v908_v31 = vadd.f32 %v1165_v16, %v907_v27 }
 0x515   :  { %v922_v32 = vadd.f32 %v921_v25, %v920_v28  ;;  %v943_v33 = vmax.f32 %v941_v29, %v942_v26 }
 0x516   :  { %v918_v34 = vmax.f32 %v908_v31, 0.0  ;;  %v930_v37 = vsel %vm154_vm0, %v919_v30, 0.0  ;;  %v951_v38 = vsel %vm154_vm0, %v919_v30, -inf }
 0x517   :  { %v923_v35 = vrot.slane %v922_v32, 4  ;;  %v944_v36 = vrot.slane %v943_v33, 4 }
 0x518   :  { %v929_v39 = vsel %vm154_vm0, %v918_v34, 0.0  ;;  %v950_v40 = vsel %vm154_vm0, %v918_v34, -inf }
 0x519   :  { %v924_v41 = vadd.f32 %v923_v35, %v922_v32  ;;  %v945_v42 = vmax.f32 %v943_v33, %v944_v36  ;;  %v931_v43 = vadd.f32 %v930_v37, %v929_v39  ;;  %v952_v44 = vmax.f32 %v950_v40, %v951_v38 }
 0x51b   :  { %v925_v45 = vrot.slane %v924_v41, 2  ;;  %v946_v46 = vrot.slane %v945_v42, 2  ;;  %v932_v47 = vrot.slane %v931_v43, 4  ;;  %v953_v48 = vrot.slane %v952_v44, 4 }
 0x51d   :  { %v926_v49 = vadd.f32 %v925_v45, %v924_v41  ;;  %v947_v50 = vmax.f32 %v945_v42, %v946_v46  ;;  %v933_v51 = vadd.f32 %v932_v47, %v931_v43  ;;  %v954_v52 = vmax.f32 %v952_v44, %v953_v48 }
 0x51f   :  { %v927_v53 = vrot.slane %v926_v49, 1  ;;  %v934_v54 = vrot.slane %v933_v51, 2  ;;  %v955_v55 = vrot.slane %v954_v52, 2  ;;  %v948_v56 = vrot.slane %v947_v50, 1 }
 0x521   :  { %v935_v57 = vadd.f32 %v934_v54, %v933_v51  ;;  %v956_v58 = vmax.f32 %v954_v52, %v955_v55  ;;  %v928_v59 = vadd.f32 %v927_v53, %v926_v49  ;;  %v949_v62 = vmax.f32 %v947_v50, %v948_v56 }
 0x523   :  { %v936_v60 = vrot.slane %v935_v57, 1  ;;  %v957_v61 = vrot.slane %v956_v58, 1  ;;  %v939_v1 = vmul.f32 0.0625, %v928_v59 }
 0x525   :  { %v937_v63 = vadd.f32 %v936_v60, %v935_v57  ;;  %v958_v0 = vmax.f32 %v956_v58, %v957_v61 }
 0x527   :  { %v940_v2 = vmul.f32 0.0625, %v937_v63  ;;  %v966_v3 = vsel %vm965_vm3, %v958_v0, %v949_v62 }
 0x528   :  { %1304 = vmatmul.mubr.msk.f32.vlgmr.msra.gmra.mxu1 %vm154_vm0, %v966_v3 }
 0x529   :  { %v1041_v4 = vsel %vm965_vm3, %v940_v2, %v939_v1 }
 0x52a   :  { %1311 = vmatmul.mubr.msk.f32.vlgmr.msra.gmra.mxu0 %vm154_vm0, %v1041_v4 }
 0x5e8   :  { %v1035_v5 = vpop.f32.mrf.mxu1 }
 0x5ea   :  { %v1305_v6 = vpop.f32.mrf.mxu1  ;;  %v1110_v7 = vpop.f32.mrf.mxu0 }
 0x5eb   :  { %v1111_v9 = vadd.f32 %v1110_v7, %v1035_v5 }
 0x5ec   :  { %v1312_v10 = vpop.f32.mrf.mxu0 }
 0x5ed   :  { %v1121_v11 = vadd.f32 %v1172_v8, %v1111_v9 }
 0x5ef   :  { %1122 = vst [vmem:[#allocation16] sm:$0x3] %v1121_v11 }
 0x5f0   :  { %1497 = shalt.err (!%p1494_p2)
}
 0x5f1   :  { %1132 = dma.vmem_to_hbm [thread:$0]  %s1130_s7, 32, %s1738_s13, [#allocation4]  }
 0x5f2   :  { %1516 = dma.done.wait [#allocation4], 32  }
 0x5f3   :  { %1517 = vsyncadd [#allocation4], 4294967264 }
 0x5f4   :  { %1136 = vsyncpa [#allocation3], 1 }
 0x5f5   :  { %1137 = vsyncpa [#allocation6], 1 }
 0x5f6   :  { %1138 = vsyncpa [#allocation9], 1 }
 0x5f7   :  { %1139 = vsyncpa [#allocation12], 1 }
 0x5f8   :  { %1140 = vsyncpa [#allocation15], 1 }
 0x5f9   :  { %1141 = vsyncpa [#allocation4], 1 }

</bundles_post_ra>
